<compile_context>
chip_gen: v7x
topology: tpu7x:2x2x1
jax: 0.10.0
libtpu: 0.0.40
codegen_flags: <defaults>
</compile_context>

<pallas_src>
import math
import functools

import jax
import jax.numpy as jnp
from jax.experimental import pallas as pl
from jax.experimental.pallas import tpu as pltpu

_SUBLANE = 8
_LOG_2PI = math.log(2.0 * math.pi)


def _round_up(x, m):
    return (x + m - 1) // m * m


def _fast_tanh_dtype():
    """bf16 tanh only where the EUP has a bf16 path (v6e / v7x); f32 elsewhere."""
    kind = jax.devices()[0].device_kind.lower()
    return jnp.bfloat16 if ("v6" in kind or "v7" in kind) else jnp.float32


# ----------------------------- kernels ------------------------------------- #

def _mlp_mu(x_ref, w0_ref, b0_ref, w1_ref, b1_ref, w2_ref, b2_ref, tanh_dtype):
    """Linear -> tanh -> Linear -> tanh -> Linear, then tanh head (mu), f32 out."""
    mxu = w0_ref.dtype                        # f32 or bf16 MXU operands, f32 accumulate
    x = x_ref[...].astype(mxu)
    h = jnp.dot(x, w0_ref[...], preferred_element_type=jnp.float32) + b0_ref[...]
    h = jnp.tanh(h.astype(tanh_dtype))        # bf16 tanh ~2x EUP throughput on v6e/v7x
    h = jnp.dot(h.astype(mxu), w1_ref[...],
                preferred_element_type=jnp.float32) + b1_ref[...]
    h = jnp.tanh(h.astype(tanh_dtype))
    logits = jnp.dot(h.astype(mxu), w2_ref[...],
                     preferred_element_type=jnp.float32) + b2_ref[...]
    return jnp.tanh(logits)                   # mu in f32


def _actor_kernel_stoch(x_ref, w0, b0, w1, b1, w2, b2, eps_ref, a_ref, *, tanh_dtype):
    mu = _mlp_mu(x_ref, w0, b0, w1, b1, w2, b2, tanh_dtype)
    # std = exp(logstd=0) = 1  ->  reparameterized sample a = mu + eps
    a_ref[...] = (mu + eps_ref[...].astype(jnp.float32)).astype(a_ref.dtype)


def _actor_kernel_det(x_ref, w0, b0, w1, b1, w2, b2, a_ref, *, tanh_dtype):
    a_ref[...] = _mlp_mu(x_ref, w0, b0, w1, b1, w2, b2, tanh_dtype).astype(a_ref.dtype)


# --------------------------- params / wrapper ------------------------------ #

def init_params(key, input_dim, hidden_dims, a_dim):
    """Deterministic synthetic 'actor' init: scaled normal weights, zero bias."""
    dims = [input_dim] + list(hidden_dims) + [a_dim]
    params = []
    for i, (din, dout) in enumerate(zip(dims[:-1], dims[1:])):
        key, wk = jax.random.split(key)
        gain = 0.01 if i == len(dims) - 2 else 1.0   # small last-layer gain ('actor')
        w = gain * jax.random.normal(wk, (din, dout), jnp.float32) / jnp.sqrt(din)
        b = jnp.zeros((1, dout), jnp.float32)
        params.append((w, b))
    return params


def prep_params(params, matmul_dtype=jnp.float32):
    """Cast weights for the MXU (bf16 halves weight/x HBM bytes on every TPU gen,
    incl. v5e); biases stay f32 (added to the f32 accumulator).  No lane padding:
    the kernel streams natural feature widths and lets Mosaic pad in VMEM."""
    return [(w.astype(matmul_dtype), b.astype(jnp.float32)) for w, b in params]


@functools.partial(jax.jit,
                   static_argnames=("deterministic", "block_m", "min_tiles", "tanh_dtype"))
def ppo_actor_forward(state, params, eps=None, *, deterministic=False,
                      block_m=2048, min_tiles=None, tanh_dtype=jnp.float32):
    # mimic torch: unsqueeze 1-D state, then flatten trailing dims
    if state.ndim == 1:
        state = state[None, :]
    B = state.shape[0]
    x = state.reshape(B, -1)

    (w0, b0), (w1, b1), (w2, b2) = params
    in_dim, a_dim = w0.shape[0], w2.shape[1]
    assert x.shape[1] == in_dim
    mxu_dtype = w0.dtype

    # ---- batch tiling: rows padded to a sublane multiple, balanced tiles ----
    # No feature (lane) padding anywhere: all blocks use full-extent last dims,
    # so HBM only streams useful bytes (x: in_dim wide, eps/a: a_dim wide).
    if min_tiles is None:
        # v7x has two TensorCores; >=2 tiles lets "parallel" shard across them.
        kind = jax.devices()[0].device_kind.lower()
        min_tiles = 2 if "v7" in kind else 1
    b8 = _round_up(B, _SUBLANE)
    n_tiles = max(pl.cdiv(b8, block_m), min_tiles)
    n_tiles = min(n_tiles, pl.cdiv(b8, _SUBLANE))        # tiles never smaller than 8 rows
    tm = _round_up(pl.cdiv(b8, n_tiles), _SUBLANE)       # balanced -> no >1-tile overshoot
    n_tiles = pl.cdiv(b8, tm)
    b_pad = n_tiles * tm

    x_p = x.astype(mxu_dtype)          # bf16 x halves the x stream (all generations)
    if b_pad != B:
        x_p = jnp.pad(x_p, ((0, b_pad - B), (0, 0)))

    def resident(arr):
        # whole array VMEM-resident across every batch tile (constant index map)
        nd = arr.ndim
        return pl.BlockSpec(arr.shape, lambda i: (0,) * nd)

    in_specs = [pl.BlockSpec((tm, in_dim), lambda i: (i, 0)),
                resident(w0), resident(b0),
                resident(w1), resident(b1),
                resident(w2), resident(b2)]
    args = [x_p, w0, b0, w1, b1, w2, b2]

    if deterministic:
        kernel = functools.partial(_actor_kernel_det, tanh_dtype=tanh_dtype)
    else:
        eps_p = eps.astype(jnp.float32)
        if b_pad != B:
            eps_p = jnp.pad(eps_p, ((0, b_pad - B), (0, 0)))
        in_specs.append(pl.BlockSpec((tm, a_dim), lambda i: (i, 0)))
        args.append(eps_p)
        kernel = functools.partial(_actor_kernel_stoch, tanh_dtype=tanh_dtype)

    # VMEM per tile at tm=2048 (double-buffered): x ~2*128KiB(f32) + eps/a ~2*32KiB
    # + tiny resident weights -- far below every generation's scoped-VMEM default
    # (incl. v7x's 32 MiB), so no vmem_limit_bytes override is needed.
    a_pad = pl.pallas_call(
        kernel,
        out_shape=jax.ShapeDtypeStruct((b_pad, a_dim), jnp.float32),
        grid=(n_tiles,),
        in_specs=in_specs,
        out_specs=pl.BlockSpec((tm, a_dim), lambda i: (i, 0)),
        compiler_params=pltpu.CompilerParams(
            dimension_semantics=("parallel",)),
    )(*args)

    a = a_pad if b_pad == B else a_pad[:B]

    # --- distribution stats (closed form, std = exp(0) = 1), wrapper-side ---
    # MVN(mu, I).log_prob(a) = -0.5*||a - mu||^2 - 0.5*d*log(2*pi);  a - mu == eps.
    if deterministic:
        sq = jnp.zeros((B, 1), jnp.float32)
    else:
        sq = jnp.sum(eps.astype(jnp.float32) ** 2, axis=-1, keepdims=True)
    logp = -0.5 * sq - 0.5 * a_dim * _LOG_2PI          # (B, 1), matches .unsqueeze(-1)
    probs = jnp.exp(logp)                              # (B, 1)
    entropy = jnp.full((B,), 0.5 * a_dim * (_LOG_2PI + 1.0), jnp.float32)   # (B,)

    info = {"probs": probs, "logprobs": logp, "entropy": entropy}
    # TODO(synk): torch returns the MultivariateNormal `dist` object; no Pallas
    # equivalent -- downstream log_prob/entropy can be recomputed from mu = a - eps.
    return a, info


# ------------------------------ reference ----------------------------------- #

def reference_forward(state, params, eps, deterministic=False):
    """Pure-JAX reference (f32 weights) for correctness checking."""
    if state.ndim == 1:
        state = state[None, :]
    x = state.reshape(state.shape[0], -1).astype(jnp.float32)
    (w0, b0), (w1, b1), (w2, b2) = params
    h = jnp.tanh(x @ w0 + b0)
    h = jnp.tanh(h @ w1 + b1)
    mu = jnp.tanh(h @ w2 + b2)
    a = mu if deterministic else mu + eps
    d = mu.shape[-1]
    if deterministic:
        sq = jnp.zeros((x.shape[0], 1), jnp.float32)
    else:
        sq = jnp.sum(eps ** 2, axis=-1, keepdims=True)
    logp = -0.5 * sq - 0.5 * d * _LOG_2PI
    ent = jnp.full((mu.shape[0],), 0.5 * d * (_LOG_2PI + 1.0), jnp.float32)
    return a, logp, jnp.exp(logp), ent


# -------------------------------- demo -------------------------------------- #

if __name__ == "__main__":
    key = jax.random.PRNGKey(0)
    k_param, k_state, k_eps, k_state2, k_eps2 = jax.random.split(key, 5)

    batch, input_dim, hidden_dims, a_dim = 2, 16, [32, 32], 4

    raw_params = init_params(k_param, input_dim, hidden_dims, a_dim)
    state = jax.random.normal(k_state, (batch, input_dim), jnp.float32)
    eps = jax.random.normal(k_eps, (batch, a_dim), jnp.float32)

    a_ref, lp_ref, p_ref, e_ref = reference_forward(state, raw_params, eps)

    # --- f32 MXU operands (exact check vs reference) ---
    params_f32 = prep_params(raw_params, jnp.float32)
    a, info = ppo_actor_forward(state, params_f32, eps)
    jax.block_until_ready((a, info))
    assert a.shape == (batch, a_dim)
    assert jnp.allclose(a, a_ref, atol=1e-5)
    assert jnp.allclose(info["logprobs"], lp_ref, atol=1e-5)
    assert jnp.allclose(info["probs"], p_ref, atol=1e-5)
    assert jnp.allclose(info["entropy"], e_ref, atol=1e-5)

    # --- deterministic path (no eps stream into the kernel at all) ---
    a_det, info_det = ppo_actor_forward(state, params_f32, eps, deterministic=True)
    jax.block_until_ready((a_det, info_det))
    a_dref, lp_dref, _, e_dref = reference_forward(state, raw_params, eps, deterministic=True)
    assert jnp.allclose(a_det, a_dref, atol=1e-5)
    assert jnp.allclose(info_det["logprobs"], lp_dref, atol=1e-5)
    assert jnp.allclose(info_det["entropy"], e_dref, atol=1e-5)

    # --- bf16 MXU operands (bandwidth win on all gens); bf16 tanh on v6e/v7x only ---
    params_bf16 = prep_params(raw_params, jnp.bfloat16)
    a_bf, info_bf = ppo_actor_forward(state, params_bf16, eps,
                                      tanh_dtype=_fast_tanh_dtype())
    jax.block_until_ready((a_bf, info_bf))
    assert jnp.allclose(a_bf, a_ref, atol=1e-2)
    assert jnp.allclose(info_bf["logprobs"], lp_ref, atol=1e-5)   # wrapper-computed, exact

    # --- multi-tile / uneven batch (row padding + balanced tiling path) ---
    B2 = 200
    state2 = jax.random.normal(k_state2, (B2, input_dim), jnp.float32)
    eps2 = jax.random.normal(k_eps2, (B2, a_dim), jnp.float32)
    a2, info2 = ppo_actor_forward(state2, params_f32, eps2, block_m=64)
    jax.block_until_ready((a2, info2))
    a2_ref, lp2_ref, _, _ = reference_forward(state2, raw_params, eps2)
    assert a2.shape == (B2, a_dim)
    assert jnp.allclose(a2, a2_ref, atol=1e-5)
    assert jnp.allclose(info2["logprobs"], lp2_ref, atol=1e-5)

    print("KERNEL_OK")
</pallas_src>

<mosaic_0001>
module attributes {stable_mosaic.version = 11 : i64} {
  func.func @_actor_kernel_stoch(%arg0: i32, %arg1: memref<8x16xf32, #tpu.memory_space<vmem>>, %arg2: memref<16x32xf32, #tpu.memory_space<vmem>>, %arg3: memref<1x32xf32, #tpu.memory_space<vmem>>, %arg4: memref<32x32xf32, #tpu.memory_space<vmem>>, %arg5: memref<1x32xf32, #tpu.memory_space<vmem>>, %arg6: memref<32x4xf32, #tpu.memory_space<vmem>>, %arg7: memref<1x4xf32, #tpu.memory_space<vmem>>, %arg8: memref<8x4xf32, #tpu.memory_space<vmem>>, %arg9: memref<8x4xf32, #tpu.memory_space<vmem>>) attributes {dimension_semantics = [#tpu.dimension_semantics<parallel>], iteration_bounds = array<i64: 1>, scalar_prefetch = 0 : i64, scratch_operands = 0 : i64, tpu.core_type = #tpu.core_type<tc>, window_params = [{transform_indices = @transform_0, window_bounds = array<i64: 8, 16>}, {pipeline_mode = #tpu.pipeline_mode<synchronous>, transform_indices = @transform_1, window_bounds = array<i64: 16, 32>}, {pipeline_mode = #tpu.pipeline_mode<synchronous>, transform_indices = @transform_2, window_bounds = array<i64: 1, 32>}, {pipeline_mode = #tpu.pipeline_mode<synchronous>, transform_indices = @transform_3, window_bounds = array<i64: 32, 32>}, {pipeline_mode = #tpu.pipeline_mode<synchronous>, transform_indices = @transform_4, window_bounds = array<i64: 1, 32>}, {pipeline_mode = #tpu.pipeline_mode<synchronous>, transform_indices = @transform_5, window_bounds = array<i64: 32, 4>}, {pipeline_mode = #tpu.pipeline_mode<synchronous>, transform_indices = @transform_6, window_bounds = array<i64: 1, 4>}, {transform_indices = @transform_7, window_bounds = array<i64: 8, 4>}, {transform_indices = @transform_8, window_bounds = array<i64: 8, 4>}]} {
    %c0 = arith.constant 0 : index
    %c0_0 = arith.constant 0 : index
    %0 = vector.load %arg1[%c0, %c0_0] : memref<8x16xf32, #tpu.memory_space<vmem>>, vector<8x16xf32>
    %c0_1 = arith.constant 0 : index
    %c0_2 = arith.constant 0 : index
    %1 = vector.load %arg2[%c0_1, %c0_2] : memref<16x32xf32, #tpu.memory_space<vmem>>, vector<16x32xf32>
    %cst = arith.constant dense<0.000000e+00> : vector<8x32xf32>
    %2 = tpu.matmul %0, %1, %cst {dimension_numbers = #tpu.dot_dimension_numbers<[1], [0], [0], [1], [0, 0, 1, 1], [], []>} : vector<8x16xf32>, vector<16x32xf32>, vector<8x32xf32> -> vector<8x32xf32>
    %c0_3 = arith.constant 0 : index
    %c0_4 = arith.constant 0 : index
    %3 = vector.load %arg3[%c0_3, %c0_4] : memref<1x32xf32, #tpu.memory_space<vmem>>, vector<1x32xf32>
    %4 = vector.broadcast %3 : vector<1x32xf32> to vector<8x32xf32>
    %5 = arith.addf %2, %4 : vector<8x32xf32>
    %6 = math.tanh %5 : vector<8x32xf32>
    %c0_5 = arith.constant 0 : index
    %c0_6 = arith.constant 0 : index
    %7 = vector.load %arg4[%c0_5, %c0_6] : memref<32x32xf32, #tpu.memory_space<vmem>>, vector<32x32xf32>
    %cst_7 = arith.constant dense<0.000000e+00> : vector<8x32xf32>
    %8 = tpu.matmul %6, %7, %cst_7 {dimension_numbers = #tpu.dot_dimension_numbers<[1], [0], [0], [1], [0, 0, 1, 1], [], []>} : vector<8x32xf32>, vector<32x32xf32>, vector<8x32xf32> -> vector<8x32xf32>
    %c0_8 = arith.constant 0 : index
    %c0_9 = arith.constant 0 : index
    %9 = vector.load %arg5[%c0_8, %c0_9] : memref<1x32xf32, #tpu.memory_space<vmem>>, vector<1x32xf32>
    %10 = vector.broadcast %9 : vector<1x32xf32> to vector<8x32xf32>
    %11 = arith.addf %8, %10 : vector<8x32xf32>
    %12 = math.tanh %11 : vector<8x32xf32>
    %c0_10 = arith.constant 0 : index
    %c0_11 = arith.constant 0 : index
    %13 = vector.load %arg6[%c0_10, %c0_11] : memref<32x4xf32, #tpu.memory_space<vmem>>, vector<32x4xf32>
    %cst_12 = arith.constant dense<0.000000e+00> : vector<8x4xf32>
    %14 = tpu.matmul %12, %13, %cst_12 {dimension_numbers = #tpu.dot_dimension_numbers<[1], [0], [0], [1], [0, 0, 1, 1], [], []>} : vector<8x32xf32>, vector<32x4xf32>, vector<8x4xf32> -> vector<8x4xf32>
    %c0_13 = arith.constant 0 : index
    %c0_14 = arith.constant 0 : index
    %15 = vector.load %arg7[%c0_13, %c0_14] : memref<1x4xf32, #tpu.memory_space<vmem>>, vector<1x4xf32>
    %16 = vector.broadcast %15 : vector<1x4xf32> to vector<8x4xf32>
    %17 = arith.addf %14, %16 : vector<8x4xf32>
    %18 = math.tanh %17 : vector<8x4xf32>
    %c0_15 = arith.constant 0 : index
    %c0_16 = arith.constant 0 : index
    %19 = vector.load %arg8[%c0_15, %c0_16] : memref<8x4xf32, #tpu.memory_space<vmem>>, vector<8x4xf32>
    %20 = arith.addf %18, %19 : vector<8x4xf32>
    %c0_17 = arith.constant 0 : index
    %c0_18 = arith.constant 0 : index
    %21 = vector.load %arg9[%c0_17, %c0_18] : memref<8x4xf32, #tpu.memory_space<vmem>>, vector<8x4xf32>
    tpu.vector_store %arg9[%c0_17, %c0_18], %20 {strides = array<i32>} : memref<8x4xf32, #tpu.memory_space<vmem>>, vector<8x4xf32>,
    return
  }
  func.func @transform_0(%arg0: i32) -> (i32, i32) {
    %c0_i32 = arith.constant 0 : i32
    %c0_i32_0 = arith.constant 0 : i32
    return %arg0, %c0_i32 : i32, i32
  }
  func.func @transform_1(%arg0: i32) -> (i32, i32) {
    %c0_i32 = arith.constant 0 : i32
    %c0_i32_0 = arith.constant 0 : i32
    %c0_i32_1 = arith.constant 0 : i32
    return %c0_i32, %c0_i32_0 : i32, i32
  }
  func.func @transform_2(%arg0: i32) -> (i32, i32) {
    %c0_i32 = arith.constant 0 : i32
    %c0_i32_0 = arith.constant 0 : i32
    %c0_i32_1 = arith.constant 0 : i32
    return %c0_i32, %c0_i32_0 : i32, i32
  }
  func.func @transform_3(%arg0: i32) -> (i32, i32) {
    %c0_i32 = arith.constant 0 : i32
    %c0_i32_0 = arith.constant 0 : i32
    %c0_i32_1 = arith.constant 0 : i32
    return %c0_i32, %c0_i32_0 : i32, i32
  }
  func.func @transform_4(%arg0: i32) -> (i32, i32) {
    %c0_i32 = arith.constant 0 : i32
    %c0_i32_0 = arith.constant 0 : i32
    %c0_i32_1 = arith.constant 0 : i32
    return %c0_i32, %c0_i32_0 : i32, i32
  }
  func.func @transform_5(%arg0: i32) -> (i32, i32) {
    %c0_i32 = arith.constant 0 : i32
    %c0_i32_0 = arith.constant 0 : i32
    %c0_i32_1 = arith.constant 0 : i32
    return %c0_i32, %c0_i32_0 : i32, i32
  }
  func.func @transform_6(%arg0: i32) -> (i32, i32) {
    %c0_i32 = arith.constant 0 : i32
    %c0_i32_0 = arith.constant 0 : i32
    %c0_i32_1 = arith.constant 0 : i32
    return %c0_i32, %c0_i32_0 : i32, i32
  }
  func.func @transform_7(%arg0: i32) -> (i32, i32) {
    %c0_i32 = arith.constant 0 : i32
    %c0_i32_0 = arith.constant 0 : i32
    return %arg0, %c0_i32 : i32, i32
  }
  func.func @transform_8(%arg0: i32) -> (i32, i32) {
    %c0_i32 = arith.constant 0 : i32
    %c0_i32_0 = arith.constant 0 : i32
    return %arg0, %c0_i32 : i32, i32
  }
}

</mosaic_0001>

<bundles_post_ra>
// kernel: ppo_actor_forward.1
= control target key start
LH: loop header
LB: loop body
LE: loop exit
PB: predicated region body
PF: predicated region fallthrough
CT: control target
= control target key end

     0   :  { %v365_v0 = vmov 0.0|0.0   ;;  %vm366_vm0 = vmmov 0   ;;  %v367_v3 = vmov 0.0   ;;  %vm39_vm1 = vcmask 130048   ;;  %s463_s1 = inlined_call_operand.vmem [shape: f32[16,32], index: 1, kind: input, shape index: {}]   ;;  %s464_s0 = inlined_call_operand.vmem [shape: f32[8,16], index: 0, kind: input, shape index: {}]   ;;  %s465_s3 = inlined_call_operand.vmem [shape: f32[32,32], index: 3, kind: input, shape index: {}]   ;;  %s466_s2 = inlined_call_operand.vmem [shape: f32[1,32], index: 2, kind: input, shape index: {}]   ;;  %s467_s5 = inlined_call_operand.vmem [shape: f32[32,4], index: 5, kind: input, shape index: {}]   ;;  %s468_s4 = inlined_call_operand.vmem [shape: f32[1,32], index: 4, kind: input, shape index: {}]   ;;  %s469_s6 = inlined_call_operand.vmem [shape: f32[1,4], index: 6, kind: input, shape index: {}]   ;;  %s470_s7 = inlined_call_operand.vmem [shape: f32[8,4], index: 7, kind: input, shape index: {}]   ;;  %s471_s8 = inlined_call_operand.vmem [shape: f32[8,4], index: 8, kind: output, shape index: {}]  }
   0x1   :  { %341 = vmatprep.subr.bf16.mxu0 %v365_v0  ;;  %v30_v1 = vld [vmem:[%s463_s1] sm:$0xff]  ;;  %v31_v2 = vld [vmem:[%s463_s1 + $0x8] sm:$0xff]  ;;  %316 = vmatprep.mubr.msk.f32.mxu0 %vm366_vm0, %v367_v3  ;;  %v116_v8 = vld [vmem:[%s465_s3 + $0x10] sm:$0xff]  ;;  %vm125_vm2 = vcmask 261120   ;;  %vm287_vm3 = vcmask 31744  }
   0x2   :  { %v342_v4 = vpack.c.bf16 %v31_v2, %v30_v1  ;;  %344 = vmatprep.subr.bf16.mxu1 %v365_v0  ;;  %327 = vmatprep.mubr.msk.f32.mxu1 %vm366_vm0, %v367_v3  ;;  %v29_v5 = vld [vmem:[%s464_s0] sm:$0xff]  ;;  %v115_v7 = vld [vmem:[%s465_s3 + $0x8] sm:$0xff]  ;;  %v117_v10 = vld [vmem:[%s465_s3 + $0x18] sm:$0xff] }
   0x3   :  { %v114_v6 = vld [vmem:[%s465_s3] sm:$0xff]  ;;  %v348_v11 = vpack.c.bf16 %v117_v10, %v116_v8  ;;  %v201_v18 = vld [vmem:[%s467_s5 + $0x8] sm:$0xff]  ;;  %v202_v19 = vld [vmem:[%s467_s5 + $0x10] sm:$0xff] }
   0x4   :  { %343 = vmatpush3.bf16.msra.mxu0 %v342_v4  ;;  %v345_v9 = vpack.c.bf16 %v115_v7, %v114_v6  ;;  %v293_v12 = vld [vmem:[%s466_s2] ss:$0 sm:$0xff]  ;;  %v203_v21 = vld [vmem:[%s467_s5 + $0x18] sm:$0xff] }
   0x5   :  { %350 = vmatprep.subr.bf16.mxu0 %v365_v0  ;;  %v200_v17 = vld [vmem:[%s467_s5] sm:$0xff]  ;;  %v354_v22 = vpack.c.bf16 %v203_v21, %v202_v19 }
   0x6   :  { %346 = vmatpush3.bf16.msra.mxu1 %v345_v9  ;;  %v351_v20 = vpack.c.bf16 %v201_v18, %v200_v17  ;;  %v295_v23 = vld [vmem:[%s468_s4] ss:$0 sm:$0xff] }
   0x7   :  { %317 = vmatmul.mubr.msk.f32.vlgmr.msra.gmra.mrb[0].mxu0 %vm39_vm1, %v29_v5  ;;  %347 = vmatprep.subr.bf16.mxu1 %v365_v0  ;;  %v297_v28 = vld [vmem:[%s469_s6] ss:$0 sm:$0xff] }
   0x8   :  { %338 = vmatprep.mubr.msk.f32.mxu0 %vm366_vm0, %v367_v3  ;;  %352 = vmatpush3.bf16.msra.mxu0 %v351_v20  ;;  %v285_v32 = vld [vmem:[%s470_s7] sm:$0xff] }
   0x9   :  { %353 = vmatprep.subr.bf16.mxu0 %v365_v0 }
   0xa   :  { %349 = vmatpush3.bf16.msra.mxu1 %v348_v11 }
   0xc   :  { %355 = vmatpush3.bf16.msra.mxu0 %v354_v22 }
  0xda   :  { %v109_v13 = vpop.f32.mrb[0].mxu0 }
  0xdb   :  { %v110_v14 = vadd.f32 %v293_v12, %v109_v13  ;;  %v318_v15 = vpop.f32.mrb[1].mxu0 }
  0xdd   :  { %359 = vtanh.f32 %v110_v14 }
  0xe7   :  { %v360_v16 = vpop.eup %359 }
  0xe8   :  { %328 = vmatmul.mubr.msk.f32.vlgmr.msra.gmra.mrb[0].mxu1 %vm125_vm2, %v360_v16 }
 0x1bb   :  { %v195_v24 = vpop.f32.mrb[0].mxu1 }
 0x1bc   :  { %v196_v25 = vadd.f32 %v295_v23, %v195_v24  ;;  %v329_v26 = vpop.f32.mrb[1].mxu1 }
 0x1be   :  { %361 = vtanh.f32 %v196_v25 }
 0x1c8   :  { %v362_v27 = vpop.eup %361 }
 0x1c9   :  { %339 = vmatmul.mubr.msk.f32.vlgmr.msra.gmra.mrb[2].mxu0 %vm125_vm2, %v362_v27 }
 0x29c   :  { %v280_v29 = vpop.f32.mrb[2].mxu0 }
 0x29d   :  { %v281_v30 = vadd.f32 %v297_v28, %v280_v29  ;;  %v340_v31 = vpop.f32.mrb[3].mxu0 }
 0x29f   :  { %363 = vtanh.f32 %v281_v30 }
 0x2a9   :  { %v364_v33 = vpop.eup %363 }
 0x2aa   :  { %v286_v34 = vadd.f32 %v364_v33, %v285_v32 }
 0x2ac   :  { %288 = vst.msk [vmem:[%s471_s8] sm:$0xff] %vm287_vm3, %v286_v34 }

</bundles_post_ra>
